<compile_context>
chip_gen: v5e
topology: v5e:2x2
jax: 0.10.0
libtpu: 0.0.40
codegen_flags: <defaults>
</compile_context>

<pallas_src>
import jax
import jax.numpy as jnp
from jax.experimental import pallas as pl
from jax.experimental.pallas import tpu as pltpu


def _clip_embed_kernel(tok_ref, emb_hbm, pos_ref, out_ref, gather_buf, sem):
    # tok_ref    : (B, n_token)          int32   SMEM (scalar prefetch)
    # emb_hbm    : (n_vocab, n_embed)    f32     HBM  (memory_space=pl.ANY)
    # pos_ref    : (n_token, n_embed)    f32     VMEM (resident, constant index)
    # out_ref    : (n_token, n_embed)    f32     VMEM (batch dim squeezed)
    # gather_buf : (n_token, n_embed)    f32     VMEM scratch (gather target)
    # sem        : (n_token,)            DMA semaphores, one per in-flight row
    b = pl.program_id(0)
    n_vocab = emb_hbm.shape[0]
    n_token = out_ref.shape[0]

    # Issue all row-gather DMAs (HBM -> VMEM); they overlap with each other.
    @pl.loop(0, n_token)
    def _start(t):
        v = tok_ref[b, t]
        v = jnp.minimum(jnp.maximum(v, 0), n_vocab - 1)   # clamp like jnp.take
        pltpu.make_async_copy(
            emb_hbm.at[pl.ds(v, 1), :],
            gather_buf.at[pl.ds(t, 1), :],
            sem.at[t],
        ).start()

    # Wait for every row to land.
    @pl.loop(0, n_token)
    def _wait(t):
        pltpu.make_async_copy(
            emb_hbm.at[pl.ds(0, 1), :],          # dummy src of matching shape
            gather_buf.at[pl.ds(t, 1), :],
            sem.at[t],
        ).wait()

    # x = token_embedding(tokens); x += position_embedding
    out_ref[...] = (gather_buf[...] + pos_ref[...]).astype(out_ref.dtype)


def clip_embedding(tokens, token_embed, pos_embed):
    """Pallas equivalent of CLIPembedding.forward."""
    B, n_token = tokens.shape
    n_vocab, n_embed = token_embed.shape
    assert pos_embed.shape == (n_token, n_embed)
    tokens = tokens.astype(jnp.int32)

    return pl.pallas_call(
        _clip_embed_kernel,
        out_shape=jax.ShapeDtypeStruct((B, n_token, n_embed), token_embed.dtype),
        grid_spec=pltpu.PrefetchScalarGridSpec(
            num_scalar_prefetch=1,               # tokens -> SMEM
            grid=(B,),
            in_specs=[
                # Embedding table never enters VMEM wholesale; rows are DMA'd.
                pl.BlockSpec(memory_space=pl.ANY),
                # Positional embedding: small, constant index -> stays resident.
                pl.BlockSpec((n_token, n_embed), lambda b, tok: (0, 0)),
            ],
            out_specs=pl.BlockSpec((None, n_token, n_embed),
                                   lambda b, tok: (b, 0, 0)),
            scratch_shapes=[
                pltpu.VMEM((n_token, n_embed), token_embed.dtype),
                pltpu.SemaphoreType.DMA((n_token,)),
            ],
        ),
        compiler_params=pltpu.CompilerParams(
            dimension_semantics=("parallel",),   # shard batch across TCs (v7x)
        ),
    )(tokens, token_embed, pos_embed)


if __name__ == "__main__":
    # Small shapes consistent with the module's forward.
    n_vocab, n_embed, n_token, batch = 64, 128, 8, 2

    key = jax.random.PRNGKey(0)
    k_emb, k_pos, k_tok = jax.random.split(key, 3)

    # nn.Embedding(n_vocab, n_embed) weight -> deterministic normal init.
    token_embed = (0.02 * jax.random.normal(k_emb, (n_vocab, n_embed))).astype(jnp.float32)
    # nn.Parameter(torch.zeros(n_token, n_embed)) -> same shape; non-zero init
    # so the add is actually exercised.
    pos_embed = (0.01 * jax.random.normal(k_pos, (n_token, n_embed))).astype(jnp.float32)
    tokens = jax.random.randint(k_tok, (batch, n_token), 0, n_vocab, dtype=jnp.int32)

    out = clip_embedding(tokens, token_embed, pos_embed)
    out = jax.block_until_ready(out)

    # Reference: x = token_embedding(tokens); x += position_embedding
    ref = jnp.take(token_embed, tokens, axis=0) + pos_embed[None, :, :]

    assert out.shape == (batch, n_token, n_embed), out.shape
    assert out.dtype == jnp.float32, out.dtype
    assert jnp.allclose(out, ref, atol=1e-6, rtol=1e-6), "mismatch vs reference"

    print("KERNEL_OK")
</pallas_src>

<mosaic_0001>
module attributes {stable_mosaic.version = 11 : i64} {
  func.func @_clip_embed_kernel(%arg0: i32, %arg1: memref<2x8xi32, #tpu.memory_space<smem>>, %arg2: memref<64x128xf32, #tpu.memory_space<any>>, %arg3: memref<8x128xf32, #tpu.memory_space<vmem>>, %arg4: memref<1x8x128xf32, #tpu.memory_space<vmem>>, %arg5: memref<8x128xf32, #tpu.memory_space<vmem>>, %arg6: memref<8x!tpu.dma_semaphore, #tpu.memory_space<semaphore_mem>>) attributes {dimension_semantics = [#tpu.dimension_semantics<parallel>], iteration_bounds = array<i64: 2>, scalar_prefetch = 1 : i64, scratch_operands = 2 : i64, tpu.core_type = #tpu.core_type<tc>, window_params = [{}, {pipeline_mode = #tpu.pipeline_mode<synchronous>, transform_indices = @transform_1, window_bounds = array<i64: 8, 128>}, {transform_indices = @transform_2, window_bounds = array<i64: 1, 8, 128>}]} {
    %c0_i32 = arith.constant 0 : i32
    %c8_i32 = arith.constant 8 : i32
    %0 = arith.addi %c0_i32, %c8_i32 : i32
    %c1_i32 = arith.constant 1 : i32
    scf.for %arg7 = %c0_i32 to %0 step %c1_i32  : i32 {
      %c1_i32_11 = arith.constant 1 : i32
      %8 = arith.muli %arg7, %c1_i32_11 : i32
      %c0_i32_12 = arith.constant 0 : i32
      %9 = arith.addi %c0_i32_12, %8 : i32
      %10 = arith.index_cast %arg0 : i32 to index
      %11 = arith.index_cast %9 : i32 to index
      %12 = memref.load %arg1[%10, %11] : memref<2x8xi32, #tpu.memory_space<smem>>
      %c0_i32_13 = arith.constant 0 : i32
      %13 = arith.maxsi %12, %c0_i32_13 : i32
      %c63_i32 = arith.constant 63 : i32
      %14 = arith.minsi %13, %c63_i32 : i32
      %c0_i32_14 = arith.constant 0 : i32
      %15 = tpu.memref_slice %arg2[%14, %c0_i32_14] : memref<64x128xf32, #tpu.memory_space<any>> -> memref<1x128xf32, #tpu.memory_space<any>>
      %c0_i32_15 = arith.constant 0 : i32
      %16 = tpu.memref_slice %arg5[%9, %c0_i32_15] : memref<8x128xf32, #tpu.memory_space<vmem>> -> memref<1x128xf32, #tpu.memory_space<vmem>>
      %17 = tpu.memref_slice %arg6[%9] : memref<8x!tpu.dma_semaphore, #tpu.memory_space<semaphore_mem>> -> memref<1x!tpu.dma_semaphore, #tpu.memory_space<semaphore_mem>>
      %18 = tpu.memref_squeeze %17 : memref<1x!tpu.dma_semaphore, #tpu.memory_space<semaphore_mem>> -> memref<!tpu.dma_semaphore, #tpu.memory_space<semaphore_mem>>
      tpu.enqueue_dma source(%15 : memref<1x128xf32, #tpu.memory_space<any>>) target(%16 : memref<1x128xf32, #tpu.memory_space<vmem>>) target_semaphore(%18 : memref<!tpu.dma_semaphore, #tpu.memory_space<semaphore_mem>>)
    }
    %c8_i32_0 = arith.constant 8 : i32
    %c0_i32_1 = arith.constant 0 : i32
    %c8_i32_2 = arith.constant 8 : i32
    %1 = arith.addi %c0_i32_1, %c8_i32_2 : i32
    %c1_i32_3 = arith.constant 1 : i32
    scf.for %arg7 = %c0_i32_1 to %1 step %c1_i32_3  : i32 {
      %c1_i32_11 = arith.constant 1 : i32
      %8 = arith.muli %arg7, %c1_i32_11 : i32
      %c0_i32_12 = arith.constant 0 : i32
      %9 = arith.addi %c0_i32_12, %8 : i32
      %c0_i32_13 = arith.constant 0 : i32
      %c0_i32_14 = arith.constant 0 : i32
      %10 = tpu.memref_slice %arg2[%c0_i32_13, %c0_i32_14] : memref<64x128xf32, #tpu.memory_space<any>> -> memref<1x128xf32, #tpu.memory_space<any>>
      %c0_i32_15 = arith.constant 0 : i32
      %11 = tpu.memref_slice %arg5[%9, %c0_i32_15] : memref<8x128xf32, #tpu.memory_space<vmem>> -> memref<1x128xf32, #tpu.memory_space<vmem>>
      %12 = tpu.memref_slice %arg6[%9] : memref<8x!tpu.dma_semaphore, #tpu.memory_space<semaphore_mem>> -> memref<1x!tpu.dma_semaphore, #tpu.memory_space<semaphore_mem>>
      %13 = tpu.memref_squeeze %12 : memref<1x!tpu.dma_semaphore, #tpu.memory_space<semaphore_mem>> -> memref<!tpu.dma_semaphore, #tpu.memory_space<semaphore_mem>>
      tpu.wait_dma2 semaphore(%13 : memref<!tpu.dma_semaphore, #tpu.memory_space<semaphore_mem>>) src(%10 : memref<1x128xf32, #tpu.memory_space<any>>) dst(%11 : memref<1x128xf32, #tpu.memory_space<vmem>>)
    }
    %c8_i32_4 = arith.constant 8 : i32
    %c0 = arith.constant 0 : index
    %c0_5 = arith.constant 0 : index
    %2 = vector.load %arg5[%c0, %c0_5] : memref<8x128xf32, #tpu.memory_space<vmem>>, vector<8x128xf32>
    %c0_6 = arith.constant 0 : index
    %c0_7 = arith.constant 0 : index
    %3 = vector.load %arg3[%c0_6, %c0_7] : memref<8x128xf32, #tpu.memory_space<vmem>>, vector<8x128xf32>
    %4 = arith.addf %2, %3 : vector<8x128xf32>
    %c0_8 = arith.constant 0 : index
    %c0_9 = arith.constant 0 : index
    %c0_10 = arith.constant 0 : index
    %5 = vector.load %arg4[%c0_8, %c0_9, %c0_10] : memref<1x8x128xf32, #tpu.memory_space<vmem>>, vector<1x8x128xf32>
    %6 = vector.shape_cast %5 : vector<1x8x128xf32> to vector<8x128xf32>
    %7 = vector.shape_cast %4 : vector<8x128xf32> to vector<1x8x128xf32>
    tpu.vector_store %arg4[%c0_8, %c0_9, %c0_10], %7 {strides = array<i32>} : memref<1x8x128xf32, #tpu.memory_space<vmem>>, vector<1x8x128xf32>,
    return
  }
  func.func @transform_1(%arg0: i32, %arg1: memref<2x8xi32, #tpu.memory_space<smem>>) -> (i32, i32) {
    %c0_i32 = arith.constant 0 : i32
    %c0_i32_0 = arith.constant 0 : i32
    %c0_i32_1 = arith.constant 0 : i32
    return %c0_i32, %c0_i32_0 : i32, i32
  }
  func.func @transform_2(%arg0: i32, %arg1: memref<2x8xi32, #tpu.memory_space<smem>>) -> (i32, i32, i32) {
    %c0_i32 = arith.constant 0 : i32
    %c0_i32_0 = arith.constant 0 : i32
    %c0_i32_1 = arith.constant 0 : i32
    return %arg0, %c0_i32, %c0_i32_0 : i32, i32, i32
  }
}

</mosaic_0001>

<bundles_post_ra>
// kernel: tpu_custom_call.1
= control target key start
LH: loop header
LB: loop body
LE: loop exit
PB: predicated region body
PF: predicated region fallthrough
CT: control target
= control target key end

     0   :  { %s559_s15 = smov [#allocation5]   ;;  %s705_s0 = inlined_call_operand.hbm [shape: s32[2,8], index: 0, kind: input, shape index: {}]   ;;  %s706_s1 = inlined_call_operand.hbm [shape: f32[64,128], index: 1, kind: input, shape index: {}]   ;;  %s707_s2 = inlined_call_operand.hbm [shape: f32[8,128], index: 2, kind: input, shape index: {}]   ;;  %s708_s3 = inlined_call_operand.hbm [shape: f32[2,8,128], index: 3, kind: output, shape index: {}]  }
   0x1   :  { %s9_s14 = sshll.u32 %s705_s0, 4  ;;  %s10_s14 = int_to_ptr.hbm [resolvable:$true] %s9_s14 }
   0x2   :  { %12 = dma.hbm_to_smem %s10_s14, 32, %s559_s15, [#allocation4] }
   0x3   :  { %523 = dma.done.wait [#allocation4], 32 }
   0x4   :  { %524 = vsyncadd [#allocation4], 4294967264 }
   0x5   :  { %15 = sfence }
   0x6   :  { %16 = vsyncpa [#allocation7], 0 }
   0x7   :  { %17 = vsyncpa [#allocation8], 0 }
   0x8   :  { %19 = vsyncpa [#allocation8 + $0x1], 0  ;;  %s585_s16 = smov 0   ;;  %s587_s17 = smov 0  }
   0x9   :  { %s589_s18 = smov 0   ;;  %s591_s19 = smov 0  }
   0xa LB: > { %s606_s0 = sadd.s32 4294967295, %s549_s19   ;;  %s312_s20 = sadd.s32 4294967294, %s549_s19   ;;  %s549_s19 = sphi %s591_s19, %s714_s19   ;;  %s545_s18 = sphi %s589_s18, %s713_s18   ;;  %s541_s17 = sphi %s587_s17, %s712_s17   ;;  %s537_s16 = sphi %s585_s16, %s711_s16  }
   0xb   : > { %s610_s21 = sadd.s32 1, %s549_s19   ;;  %s53_s22 = sadd.s32 1, %s545_s18 }
   0xc   : > { %s50_s23 = ssub.s32 %s549_s19, %s610_s21  ;;  %p63_p0 = scmp.ne.s32.totalorder %s545_s18, %s541_s17 }
   0xd   : > { %p51_p1 = scmp.eq.s32.totalorder %s50_s23, 0  ;;  %p64_p2 = scmp.eq.s32.totalorder %s606_s0, 1 }
   0xe   : > { %p69_p3 = scmp.ne.s32.totalorder %s541_s17, %s537_s16  ;;  %p70_p4 = scmp.eq.s32.totalorder %s312_s20, 1 }
   0xf   : > { %s621_s24 = scalar_select %p51_p1, %s545_s18, %s53_s22  }
  0x10   : > { %p623_p5 = por %p64_p2, %p63_p0  ;;  %p627_p6 = por %p70_p4, %p69_p3 }
  0x11   : > { %p313_p7 = scmp.ge.s32.totalorder %s549_s19, 1  ;;  %p77_p8 = scmp.lt.s32.totalorder %s549_s19, 3 }
  0x12   : > { %p352_p9 = scmp.eq.s32.totalorder %s606_s0, 0  ;;  %s89_s29 = sshll.u32 %s707_s2, 4  ;;  %s90_s29 = int_to_ptr.hbm [resolvable:$true] %s89_s29 }
  0x13   : > { %p78_p10 = pnand %p313_p7, %p77_p8  ;;  %s560_s30 = smov [#allocation6]  }
  0x14   : > { %s91_s4 = sshll.u32 %s560_s30, 4  ;;  %s92_s4 = int_to_ptr.vmem [resolvable:$true] %s91_s4 }
  0x15   : > { %p344_p11 = pneg %p78_p10  ;;  %104 = sbr.rel (%p78_p10) target bundleno = 93 (0x5d), region = 24 }
  0x17   : > { %p345_p12 = pnand %p352_p9, %p344_p11 }
  0x19   : > { %347 = dma.hbm_to_vmem [thread:$0]  (!%p345_p12), %s90_s29, 128, %s92_s4, [#allocation7]  }
  0x1a   : > { %526 = dma.done.wait (%p352_p9), [#allocation7], 128  }
  0x1b   : > { %528 = vsyncadd (%p352_p9), [#allocation7], 4294967168  ;;  %s117_s5 = sand.u32 1, %s541_s17   ;;  %s643_s8 = smov 0  }
  0x1c   : > { %s640_s6 = sshll.u32 %s117_s5, 3 }
  0x1d   : > { %s119_s7 = scalar_lea.vmem [#allocation9], %s640_s6 }
  0x1e LB: >> { %s126_s9 = sshra.s32 %s553_s8, 7  ;;  %s131_s10 = sand.u32 127, %s553_s8  ;;  %s553_s8 = sphi %s643_s8, %s125_s8  }
  0x1f   : >> { %s128_s11 = sadd.s32 %s606_s0, %s126_s9  ;;  %s139_s15 = scalar_lea.vmem [#allocation2], %s553_s8 }
  0x20   : >> { %s318_s12 = sshll.u32 %s128_s11, 7  ;;  %s652_s20 = sshll.u32 %s139_s15, 4  ;;  %s151_s20 = int_to_ptr.vmem [resolvable:$true] %s652_s20 }
  0x21   : >> { %s132_s13 = sadd.s32 %s318_s12, %s131_s10  ;;  %s140_s29 = scalar_lea.sflag [#allocation3], %s553_s8 }
  0x22   : >> { %s133_s14 = sld [smem:[#allocation5 + %s132_s13]]  ;;  %s451_s11 = scalar_lea.hbm %s706_s1, 64 }
  0x28   : >> { %p134_p13 = scmp.gt.s32.totalorder %s133_s14, 0  ;;  %p319_p0 = scmp.lt.s32.totalorder %s133_s14, 63 }
  0x2a   : >> { %s716_s14 = smov (!%p134_p13, %s133_s14), 0 }
  0x2b   : >> { %s718_s14 = smov (!%p319_p0, %s716_s14), 63 }
  0x2c   : >> { %s138_s27 = scalar_lea.hbm %s706_s1, %s718_s14 }
  0x2d   : >> { %s148_s28 = sshll.u32 %s138_s27, 4  ;;  %s149_s28 = int_to_ptr.hbm [resolvable:$true] %s148_s28 }
  0x2e   : >> { %s447_s30 = sshra.s32 %s149_s28, 4  ;;  %s448_s30 = int_to_ptr.hbm [resolvable:$true] %s447_s30 }
  0x2f   : >> { %s449_s4 = scalar_lea.hbm %s448_s30, 1  ;;  %p452_p2 = scmp.lt.s32.totalorder %s448_s30, %s706_s1 }
  0x30   : >> { %p450_p1 = scmp.ne.s32.totalorder %s448_s30, %s449_s4  ;;  %p453_p3 = scmp.lt.s32.totalorder %s451_s11, %s449_s4 }
  0x32   : >> { %p454_p4 = por %p453_p3, %p452_p2 }
  0x34   : >> { %p455_p7 = pnand %p454_p4, %p450_p1 }
  0x36   : >> { %458 = shalt.err (!%p455_p7)  }
  0x37   : >> { %s459_s14 = sshra.s32 %s151_s20, 4  ;;  %s561_s22 = smov [#allocation2]   ;;  %s460_s14 = int_to_ptr.vmem [resolvable:$true] %s459_s14 }
  0x38   : >> { %s461_s15 = scalar_lea.vmem %s460_s14, 1  ;;  %s463_s23 = scalar_lea.vmem %s561_s22, 8 }
  0x39   : >> { %p462_p8 = scmp.ne.s32.totalorder %s460_s14, %s461_s15  ;;  %p464_p9 = scmp.lt.s32.totalorder %s460_s14, [#allocation2] }
  0x3a   : >> { %p465_p10 = scmp.lt.s32.totalorder %s463_s23, %s461_s15 }
  0x3c   : >> { %p466_p11 = por %p465_p10, %p464_p9 }
  0x3e   : >> { %p467_p12 = pnand %p466_p11, %p462_p8 }
  0x40   : >> { %470 = shalt.err (!%p467_p12)  }
  0x41   : >> { %153 = dma.hbm_to_vmem [thread:$0]  %s149_s28, 16, %s151_s20, %s140_s29 }
  0x42   : >> { %s125_s8 = sadd.s32 1, %s553_s8  }
  0x43   : >> { %p122_p13 = scmp.ge.s32.totalorder %s125_s8, 8  }
  0x44   : > { %s555_s27 = smov (%p122_p13), 0  }
  0x45   : > { %124 = sbr.rel (!%p122_p13) target bundleno = 30 (0x1e), region = 90 }
  0x4a LB: >> { %s160_s30 = scalar_lea.sflag [#allocation3], %s557_s27  ;;  %s557_s27 = sphi %s555_s27, %s159_s27  }
  0x4b   : >> { %529 = dma.done.wait %s160_s30, 16 }
  0x4c   : >> { %530 = vsyncadd %s160_s30, 4294967280  ;;  %s159_s27 = sadd.s32 1, %s557_s27  }
  0x4d   : >> { %p156_p0 = scmp.ge.s32.totalorder %s159_s27, 8  }
  0x4e   : > { %v164_v0 = vld [vmem:[#allocation2] sm:$0xff] (%p156_p0)  ;;  %v165_v1 = vld [vmem:[#allocation6] sm:$0xff] (%p156_p0)  ;;  %s325_s8 = sshll.u32 (%p156_p0), %s606_s0, 3  ;;  %s181_s4 = sshll.u32 (%p156_p0), %s119_s7, 4  ;;  %s182_s4 = int_to_ptr.vmem [resolvable:$true] %s181_s4 }
  0x4f   : > { %158 = sbr.rel (!%p156_p0) target bundleno = 74 (0x4a), region = 101  ;;  %v166_v2 = vadd.f32 (%p156_p0), %v165_v1, %v164_v0  ;;  %s179_s29 = scalar_lea.hbm (%p156_p0), %s708_s3, %s325_s8 }
  0x50   : > { %s183_s9 = sshll.u32 (%p156_p0), %s179_s29, 4  ;;  %s169_s10 = scalar_lea.sflag (%p156_p0), [#allocation8], %s117_s5  ;;  %s184_s9 = int_to_ptr.hbm [resolvable:$true] %s183_s9 }
  0x51   : > { %167 = vst [vmem:[%s119_s7] sm:$0xff] (%p156_p0), %v166_v2  ;;  %s485_s11 = sshra.s32 (%p156_p0), %s184_s9, 4  ;;  %s491_s14 = scalar_lea.hbm (%p156_p0), %s708_s3, 16  ;;  %s486_s11 = int_to_ptr.hbm [resolvable:$true] %s485_s11 }
  0x52   : > { %s487_s12 = scalar_lea.hbm (%p156_p0), %s486_s11, 8  ;;  %p492_p4 = scmp.lt.s32.totalorder (%p156_p0), %s486_s11, %s708_s3 }
  0x53   : > { %p488_p1 = scmp.ne.s32.totalorder (%p156_p0), %s486_s11, %s487_s12  ;;  %p493_p7 = scmp.lt.s32.totalorder (%p156_p0), %s491_s14, %s487_s12 }
  0x55   : > { %p489_p2 = pnand %p488_p1, %p623_p5  ;;  %p494_p8 = por %p493_p7, %p492_p4 }
  0x57   : > { %p490_p3 = pneg %p489_p2 }
  0x59   : > { %p495_p9 = pnand %p494_p8, %p490_p3 }
  0x5b   : > { %498 = shalt.err (!%p495_p9)
}
  0x5c   : > { %342 = dma.vmem_to_hbm [thread:$0]  (%p623_p5), %s182_s4, 128, %s184_s9, %s169_s10  }
  0x5d PF: > { %p354_p10 = scmp.ge.s32.totalorder %s549_s19, 2  ;;  %s195_s5 = sand.u32 1, %s537_s16  }
  0x5e   : > { %s196_s6 = scalar_lea.sflag [#allocation8], %s195_s5 }
  0x5f   : > { %p349_p11 = pnand %p354_p10, %p627_p6 }
  0x61   : > { %p350_p12 = pneg %p349_p11 }
  0x63   : > { %532 = dma.done.wait (%p350_p12), %s196_s6, 128  }
  0x64   : > { %534 = vsyncadd (%p350_p12), %s196_s6, 4294967168  ;;  %p22_p13 = scmp.ge.s32.totalorder %s610_s21, 4   ;;  %s711_s16 = smov %s541_s17 }
  0x65   : > { %s712_s17 = smov %s545_s18  ;;  %s713_s18 = smov %s621_s24 }
  0x66   : > { %s714_s19 = smov %s610_s21  ;;  %24 = sbr.rel (!%p22_p13) target bundleno = 10 (0xa), region = 112 }
  0x6b   :  { %202 = vsyncpa [#allocation7], 1 }
  0x6c   :  { %204 = vsyncpa [#allocation7 + $0x1], 1 }
  0x6d   :  { %205 = vsyncpa [#allocation8], 1 }
  0x6e   :  { %207 = vsyncpa [#allocation8 + $0x1], 1 }
  0x6f   :  { %208 = vsyncmov [#allocation3] }
  0x72   :  { %s209_s19 = vpop.sfrf %208 }
  0x73   :  { %p328_p5 = scmp.ne.s32.totalorder %s209_s19, 0 }
  0x75   :  { %213 = shalt.err (%p328_p5)  }
  0x76   :  { %215 = vsyncmov [#allocation3 + $0x1] }
  0x79   :  { %s216_s25 = vpop.sfrf %215 }
  0x7a   :  { %p329_p6 = scmp.ne.s32.totalorder %s216_s25, 0 }
  0x7c   :  { %220 = shalt.err (%p329_p6)  }
  0x7d   :  { %222 = vsyncmov [#allocation3 + $0x2] }
  0x80   :  { %s223_s26 = vpop.sfrf %222 }
  0x81   :  { %p330_p0 = scmp.ne.s32.totalorder %s223_s26, 0 }
  0x83   :  { %227 = shalt.err (%p330_p0)  }
  0x84   :  { %229 = vsyncmov [#allocation3 + $0x3] }
  0x87   :  { %s230_s24 = vpop.sfrf %229 }
  0x88   :  { %p331_p1 = scmp.ne.s32.totalorder %s230_s24, 0 }
  0x8a   :  { %234 = shalt.err (%p331_p1)  }
  0x8b   :  { %236 = vsyncmov [#allocation3 + $0x4] }
  0x8e   :  { %s237_s1 = vpop.sfrf %236 }
  0x8f   :  { %p332_p2 = scmp.ne.s32.totalorder %s237_s1, 0 }
  0x91   :  { %241 = shalt.err (%p332_p2)  }
  0x92   :  { %243 = vsyncmov [#allocation3 + $0x5] }
  0x95   :  { %s244_s2 = vpop.sfrf %243 }
  0x96   :  { %p333_p3 = scmp.ne.s32.totalorder %s244_s2, 0 }
  0x98   :  { %248 = shalt.err (%p333_p3)  }
  0x99   :  { %250 = vsyncmov [#allocation3 + $0x6] }
  0x9c   :  { %s251_s3 = vpop.sfrf %250 }
  0x9d   :  { %p334_p4 = scmp.ne.s32.totalorder %s251_s3, 0 }
  0x9f   :  { %255 = shalt.err (%p334_p4)  }
  0xa0   :  { %257 = vsyncmov [#allocation3 + $0x7] }
  0xa3   :  { %s258_s16 = vpop.sfrf %257 }
  0xa4   :  { %p335_p7 = scmp.ne.s32.totalorder %s258_s16, 0 }
  0xa6   :  { %262 = shalt.err (%p335_p7)  }

</bundles_post_ra>
